<compile_context>
chip_gen: v7x
topology: tpu7x:2x2x1
jax: 0.10.0
libtpu: 0.0.40
codegen_flags: <defaults>
</compile_context>

<pallas_src>
import jax
import jax.numpy as jnp
from jax.experimental import pallas as pl
from jax.experimental.pallas import tpu as pltpu


def _make_mixpad_kernel(H, W, pad_x, pad_y):
    """Kernel factory: pad_y -> circular along H, pad_x -> replicate along W."""
    Ho, Wo = H + 2 * pad_y, W + 2 * pad_x

    def kernel(x_ref, o_ref):
        x = x_ref[...]                      # (TB, H, W)
        tb = x.shape[0]

        # --- circular padding along H: write the middle columns in place ----
        o_ref[:, pad_y:pad_y + H, pad_x:pad_x + W] = x
        if pad_y > 0:
            # last pad_y rows wrap to the top, first pad_y rows wrap to bottom
            o_ref[:, 0:pad_y, pad_x:pad_x + W] = x[:, H - pad_y:H, :]
            o_ref[:, pad_y + H:Ho, pad_x:pad_x + W] = x[:, 0:pad_y, :]

        # --- replicate padding along W: broadcast the already-written -------
        # --- boundary columns of the output into the pad columns.     -------
        if pad_x > 0:
            lcol = o_ref[:, :, pad_x:pad_x + 1]            # (TB, Ho, 1)
            rcol = o_ref[:, :, pad_x + W - 1:pad_x + W]    # (TB, Ho, 1)
            o_ref[:, :, 0:pad_x] = jnp.broadcast_to(lcol, (tb, Ho, pad_x))
            o_ref[:, :, pad_x + W:Wo] = jnp.broadcast_to(rcol, (tb, Ho, pad_x))

    return kernel


def _choose_block_planes(NC, H, W, Ho, Wo, itemsize,
                         vmem_budget_bytes=20 * 1024 * 1024):
    """Pick how many channel planes to process per grid step.

    Double-buffered input (TB,H,W) + output (TB,Ho,Wo) tiles must fit the
    budget.  20 MiB is conservative for v7x (64 MiB physical / 32 MiB scoped
    VMEM) and leaves plenty of headroom on v5e/v6e (128 MiB).
    """
    per_plane = (H * W + Ho * Wo) * itemsize
    tb = max(1, vmem_budget_bytes // (2 * per_plane))
    if NC >= 2:
        # Keep at least 2 grid steps so both v7x TensorCores are used.
        tb = min(tb, -(-NC // 2))
    return int(min(tb, NC))


def mixpad2d(x, padding=(1, 1), modes=("replicate", "circular")):
    """Pallas implementation of MixPad2d.forward for the default modes.

    x: (N, C, H, W) array. Returns (N, C, H + 2*padding[1], W + 2*padding[0]).
    """
    assert tuple(modes) == ("replicate", "circular"), \
        "Only the default modes ['replicate', 'circular'] are implemented."
    pad_x, pad_y = int(padding[0]), int(padding[1])
    assert pad_x >= 0 and pad_y >= 0, "padding must be non-negative"

    N, C, H, W = x.shape
    assert pad_y <= H, "circular padding along H requires pad_y <= H"

    Ho, Wo = H + 2 * pad_y, W + 2 * pad_x
    NC = N * C
    x_flat = x.reshape(NC, H, W)
    itemsize = jnp.dtype(x.dtype).itemsize

    TB = _choose_block_planes(NC, H, W, Ho, Wo, itemsize)
    grid = (pl.cdiv(NC, TB),)

    kernel = _make_mixpad_kernel(H, W, pad_x, pad_y)

    out_flat = pl.pallas_call(
        kernel,
        out_shape=jax.ShapeDtypeStruct((NC, Ho, Wo), x.dtype),
        grid_spec=pltpu.PrefetchScalarGridSpec(
            num_scalar_prefetch=0,
            grid=grid,
            in_specs=[pl.BlockSpec((TB, H, W), lambda i: (i, 0, 0))],
            out_specs=pl.BlockSpec((TB, Ho, Wo), lambda i: (i, 0, 0)),
        ),
        compiler_params=pltpu.CompilerParams(
            dimension_semantics=("parallel",),
            vmem_limit_bytes=32 * 1024 * 1024,
        ),
        cost_estimate=pl.CostEstimate(
            flops=0,
            transcendentals=0,
            bytes_accessed=NC * (H * W + Ho * Wo) * itemsize,
        ),
    )(x_flat)

    return out_flat.reshape(N, C, Ho, Wo)


def _reference(x, padding=(1, 1)):
    """Pure-JAX reference mirroring the PyTorch forward."""
    pad_x, pad_y = padding
    # circular along H
    x = jnp.pad(x, ((0, 0), (0, 0), (pad_y, pad_y), (0, 0)), mode="wrap")
    # replicate along W
    x = jnp.pad(x, ((0, 0), (0, 0), (0, 0), (pad_x, pad_x)), mode="edge")
    return x


if __name__ == "__main__":
    key = jax.random.PRNGKey(0)
    N, C, H, W = 2, 4, 16, 16
    x = jax.random.normal(key, (N, C, H, W), dtype=jnp.float32)

    out = mixpad2d(x, padding=(1, 1), modes=("replicate", "circular"))
    out = jax.block_until_ready(out)

    ref = _reference(x, padding=(1, 1))
    assert out.shape == (N, C, H + 2, W + 2), out.shape
    assert jnp.allclose(out, ref), "mismatch vs reference padding"

    print("KERNEL_OK")
</pallas_src>

<mosaic_0001>
module attributes {stable_mosaic.version = 11 : i64} {
  func.func @kernel(%arg0: i32, %arg1: memref<4x16x16xf32, #tpu.memory_space<vmem>>, %arg2: memref<4x18x18xf32, #tpu.memory_space<vmem>>) attributes {dimension_semantics = [#tpu.dimension_semantics<parallel>], iteration_bounds = array<i64: 2>, scalar_prefetch = 0 : i64, scratch_operands = 0 : i64, tpu.core_type = #tpu.core_type<tc>, window_params = [{transform_indices = @transform_0, window_bounds = array<i64: 4, 16, 16>}, {transform_indices = @transform_1, window_bounds = array<i64: 4, 18, 18>}]} {
    %c0 = arith.constant 0 : index
    %c0_0 = arith.constant 0 : index
    %c0_1 = arith.constant 0 : index
    %0 = vector.load %arg1[%c0, %c0_0, %c0_1] : memref<4x16x16xf32, #tpu.memory_space<vmem>>, vector<4x16x16xf32>
    %c0_2 = arith.constant 0 : index
    %c1 = arith.constant 1 : index
    %c1_3 = arith.constant 1 : index
    %1 = vector.load %arg2[%c0_2, %c1, %c1_3] : memref<4x18x18xf32, #tpu.memory_space<vmem>>, vector<4x16x16xf32>
    tpu.vector_store %arg2[%c0_2, %c1, %c1_3], %0 {strides = array<i32>} : memref<4x18x18xf32, #tpu.memory_space<vmem>>, vector<4x16x16xf32>,
    %2 = vector.extract_strided_slice %0 {offsets = [0, 15, 0], sizes = [4, 1, 16], strides = [1, 1, 1]} : vector<4x16x16xf32> to vector<4x1x16xf32>
    %c0_4 = arith.constant 0 : index
    %c0_5 = arith.constant 0 : index
    %c1_6 = arith.constant 1 : index
    %3 = vector.load %arg2[%c0_4, %c0_5, %c1_6] : memref<4x18x18xf32, #tpu.memory_space<vmem>>, vector<4x1x16xf32>
    tpu.vector_store %arg2[%c0_4, %c0_5, %c1_6], %2 {strides = array<i32>} : memref<4x18x18xf32, #tpu.memory_space<vmem>>, vector<4x1x16xf32>,
    %4 = vector.extract_strided_slice %0 {offsets = [0, 0, 0], sizes = [4, 1, 16], strides = [1, 1, 1]} : vector<4x16x16xf32> to vector<4x1x16xf32>
    %c0_7 = arith.constant 0 : index
    %c17 = arith.constant 17 : index
    %c1_8 = arith.constant 1 : index
    %5 = vector.load %arg2[%c0_7, %c17, %c1_8] : memref<4x18x18xf32, #tpu.memory_space<vmem>>, vector<4x1x16xf32>
    tpu.vector_store %arg2[%c0_7, %c17, %c1_8], %4 {strides = array<i32>} : memref<4x18x18xf32, #tpu.memory_space<vmem>>, vector<4x1x16xf32>,
    %c0_9 = arith.constant 0 : index
    %c0_10 = arith.constant 0 : index
    %c1_11 = arith.constant 1 : index
    %6 = vector.load %arg2[%c0_9, %c0_10, %c1_11] : memref<4x18x18xf32, #tpu.memory_space<vmem>>, vector<4x18x1xf32>
    %c0_12 = arith.constant 0 : index
    %c0_13 = arith.constant 0 : index
    %c16 = arith.constant 16 : index
    %7 = vector.load %arg2[%c0_12, %c0_13, %c16] : memref<4x18x18xf32, #tpu.memory_space<vmem>>, vector<4x18x1xf32>
    %c0_14 = arith.constant 0 : index
    %c0_15 = arith.constant 0 : index
    %c0_16 = arith.constant 0 : index
    %8 = vector.load %arg2[%c0_14, %c0_15, %c0_16] : memref<4x18x18xf32, #tpu.memory_space<vmem>>, vector<4x18x1xf32>
    tpu.vector_store %arg2[%c0_14, %c0_15, %c0_16], %6 {strides = array<i32>} : memref<4x18x18xf32, #tpu.memory_space<vmem>>, vector<4x18x1xf32>,
    %c0_17 = arith.constant 0 : index
    %c0_18 = arith.constant 0 : index
    %c17_19 = arith.constant 17 : index
    %9 = vector.load %arg2[%c0_17, %c0_18, %c17_19] : memref<4x18x18xf32, #tpu.memory_space<vmem>>, vector<4x18x1xf32>
    tpu.vector_store %arg2[%c0_17, %c0_18, %c17_19], %7 {strides = array<i32>} : memref<4x18x18xf32, #tpu.memory_space<vmem>>, vector<4x18x1xf32>,
    return
  }
  func.func @transform_0(%arg0: i32) -> (i32, i32, i32) {
    %c0_i32 = arith.constant 0 : i32
    %c0_i32_0 = arith.constant 0 : i32
    %c0_i32_1 = arith.constant 0 : i32
    return %arg0, %c0_i32, %c0_i32_0 : i32, i32, i32
  }
  func.func @transform_1(%arg0: i32) -> (i32, i32, i32) {
    %c0_i32 = arith.constant 0 : i32
    %c0_i32_0 = arith.constant 0 : i32
    %c0_i32_1 = arith.constant 0 : i32
    return %arg0, %c0_i32, %c0_i32_0 : i32, i32, i32
  }
}

</mosaic_0001>

<bundles_post_ra>
// kernel: tpu_custom_call.1
= control target key start
LH: loop header
LB: loop body
LE: loop exit
PB: predicated region body
PF: predicated region fallthrough
CT: control target
= control target key end

     0   :  { %6 = vsyncpa [#allocation3], 0  ;;  %s756_s0 = inlined_call_operand.hbm [shape: f32[8,16,16], index: 0, kind: input, shape index: {}]   ;;  %s757_s1 = inlined_call_operand.vmem [shape: f32[8,18,18], index: 1, kind: output, shape index: {}]  }
   0x1   :  { %8 = vsyncpa [#allocation3 + $0x1], 0  ;;  %s535_s6 = smov 0   ;;  %s537_s7 = smov 0  }
   0x2   :  { %s539_s8 = smov 0   ;;  %s541_s9 = smov 0  }
   0x3 LB: > { %s394_s10 = sadd.s32 4294967295, %s518_s9   ;;  %s555_s11 = sadd.s32 1, %s518_s9   ;;  %s518_s9 = sphi %s541_s9, %s764_s9   ;;  %s514_s8 = sphi %s539_s8, %s763_s8   ;;  %s510_s7 = sphi %s537_s7, %s762_s7   ;;  %s506_s6 = sphi %s535_s6, %s761_s6  }
   0x4   : > { %s18_s12 = ssub.s32 %s518_s9, %s555_s11  ;;  %s21_s13 = sadd.s32 1, %s514_s8 }
   0x5   : > { %p19_p0 = scmp.eq.s32.totalorder %s18_s12, 0  ;;  %p28_p1 = scmp.ne.s32.totalorder %s514_s8, %s510_s7 }
   0x6   : > { %p29_p2 = scmp.eq.s32.totalorder %s518_s9, 0  ;;  %p34_p3 = scmp.ne.s32.totalorder %s510_s7, %s506_s6 }
   0x7   : > { %s565_s14 = scalar_select %p19_p0, %s514_s8, %s21_s13  }
   0x8   : > { %p30_p4 = por %p29_p2, %p28_p1  ;;  %p35_p5 = scmp.eq.s32.totalorder %s394_s10, 0 }
   0x9   : > { %p417_p6 = scmp.lt.s32.totalorder %s518_s9, 2  ;;  %s84_s16 = sand.u32 1, %s514_s8  }
   0xa   : > { %p570_p7 = por %p35_p5, %p34_p3  ;;  %s398_s17 = sshll.u32 %s84_s16, 6 }
   0xb   : > { %s409_s18 = sshll.u32 %s518_s9, 10  ;;  %s88_s22 = scalar_lea.vmem [#allocation2], %s398_s17 }
   0xc   : > { %s579_s21 = scalar_lea.hbm %s756_s0, %s409_s18  ;;  %s96_s23 = sshll.u32 %s88_s22, 4  ;;  %s581_s23 = int_to_ptr.vmem [resolvable:$true] %s96_s23 }
   0xd   : > { %p583_p8 = pnand %p417_p6, %p30_p4  ;;  %s588_s25 = scalar_lea.sflag [#allocation3], %s84_s16 }
   0xe   : > { %s454_s26 = scalar_lea.hbm %s579_s21, 1024  ;;  %s459_s29 = scalar_lea.hbm %s756_s0, 2048 }
   0xf   : > { %p455_p10 = scmp.ne.s32.totalorder %s579_s21, %s454_s26  ;;  %p456_p11 = pneg %p583_p8 }
  0x10   : > { %p460_p0 = scmp.lt.u32.totalorder %s579_s21, %s756_s0  ;;  %p461_p1 = scmp.lt.u32.totalorder %s459_s29, %s454_s26 }
  0x11   : > { %p457_p12 = pnand %p456_p11, %p455_p10  ;;  %p463_p3 = scmp.lt.u32.totalorder %s454_s26, %s579_s21 }
  0x12   : > { %p462_p2 = por %p461_p1, %p460_p0 }
  0x13   : > { %p458_p13 = pneg %p457_p12 }
  0x14   : > { %p464_p4 = por %p463_p3, %p462_p2 }
  0x16   : > { %p465_p5 = pnand %p464_p4, %p458_p13 }
  0x18   : > { %468 = shalt.err (!%p465_p5)
}
  0x19   : > { %s469_s3 = scalar_lea.vmem %s581_s23, 1024  ;;  %s520_s4 = smov [#allocation2]  }
  0x1a   : > { %p470_p6 = scmp.ne.s32.totalorder %s581_s23, %s469_s3  ;;  %s474_s5 = sshll.u32 %s520_s4, 4  ;;  %s475_s5 = int_to_ptr.vmem [resolvable:$false] %s474_s5 }
  0x1b   : > { %s476_s6 = scalar_lea.vmem %s475_s5, 2048  ;;  %p477_p9 = scmp.lt.s32.totalorder %s581_s23, %s475_s5 }
  0x1c   : > { %p472_p10 = pnand %p470_p6, %p456_p11  ;;  %p478_p0 = scmp.lt.s32.totalorder %s476_s6, %s469_s3 }
  0x1e   : > { %p473_p12 = pneg %p472_p10  ;;  %p479_p1 = por %p478_p0, %p477_p9 }
  0x20   : > { %p480_p2 = pnand %p479_p1, %p473_p12 }
  0x22   : > { %483 = shalt.err (!%p480_p2)
}
  0x23   : > { %s521_s12 = smov 128   ;;  %s522_s13 = smov 8  }
  0x24   : > { %416 = dma.hbm_to_vmem [thread:$0]  (!%p583_p8), %s579_s21, 1024, %s581_s23, %s588_s25, %s521_s12, %s521_s12, %s522_s13  }
  0x25   : > { %p104_p11 = scmp.lt.s32.totalorder %s518_s9, 3  ;;  %p760_p13 = scmp.ge.s32.totalorder %s518_s9, 1 }
  0x27   : > { %p105_p3 = pnand %p760_p13, %p104_p11 }
  0x28   : > { %s110_s16 = sand.u32 (!%p105_p3), 1, %s510_s7  }
  0x29   : > { %108 = sbr.rel (%p105_p3) target bundleno = 338 (0x152), region = 24  ;;  %s403_s17 = sshll.u32 (!%p105_p3), %s110_s16, 6 }
  0x2a   : > { %s111_s18 = scalar_lea.sflag (!%p105_p3), [#allocation3], %s110_s16  ;;  %s114_s19 = scalar_lea.vmem (!%p105_p3), [#allocation2], %s403_s17 }
  0x30   : > { %501 = dma.done.wait (%p570_p7), %s111_s18, 1024  }
  0x31   : > { %503 = vsyncadd (%p570_p7), %s111_s18, 4294966272  ;;  %v144_v0 = vld [vmem:[%s114_s19 + $0x10] sm:$0xff]  ;;  %v142_v1 = vld [vmem:[%s114_s19] sm:$0xff]  ;;  %s523_s20 = smov 1   ;;  %s404_s15 = sshll.u32 %s394_s10, 2  ;;  %vm182_vm0 = vcmask 138248  }
  0x32   : > { %162 = vrot.lane.b32.xlu1 %v144_v0, %s523_s20  ;;  %158 = vrot.lane.b32.xlu0 %v142_v1, %s523_s20  ;;  %v145_v2 = vld [vmem:[%s114_s19 + $0x18] sm:$0xff]  ;;  %v143_v3 = vld [vmem:[%s114_s19 + $0x8] sm:$0xff]  ;;  %p136_p7 = scmp.lt.s32.totalorder %s404_s15, 7  ;;  %vm196_vm1 = vcmask 131080   ;;  %vm191_vm2 = vcmask 138255   ;;  %s524_s9 = smov 127  }
  0x33   : > { %v147_v4 = vld [vmem:[%s114_s19 + $0x28] sm:$0xff]  ;;  %v146_v5 = vld [vmem:[%s114_s19 + $0x20] sm:$0xff]  ;;  %v149_v6 = vld [vmem:[%s114_s19 + $0x38] sm:$0xff]  ;;  %vm261_vm3 = vcmask 7168   ;;  %vm264_vm4 = vcmask 1024   ;;  %vm311_vm5 = vcmask 146568  }
  0x34   : > { %v148_v7 = vld [vmem:[%s114_s19 + $0x30] sm:$0xff]  ;;  %s766_s15 = smov (!%p136_p7, %s404_s15), 7  ;;  %vm314_vm6 = vcmask 140424  }
  0x35   : > { %s410_s21 = smul.u32 24, %s766_s15 }
  0x36   : > { %164 = vrot.lane.b32.xlu1 %v145_v2, %s523_s20  ;;  %160 = vrot.lane.b32.xlu0 %v143_v3, %s523_s20 }
  0x37   : > { %s637_s24 = scalar_lea.vmem %s757_s1, %s410_s21 }
  0x3a   : > { %168 = vrot.lane.b32.xlu1 %v147_v4, %s523_s20  ;;  %166 = vrot.lane.b32.xlu0 %v146_v5, %s523_s20 }
  0x3e   : > { %172 = vrot.lane.b32.xlu1 %v149_v6, %s523_s20  ;;  %170 = vrot.lane.b32.xlu0 %v148_v7, %s523_s20 }
  0xa4   : > { %v163_v8 = vpop.permute.xlu1 %162  ;;  %v159_v9 = vpop.permute.xlu0 %158 }
  0xa5   : > { %183 = vst.msk [vmem:[%s637_s24 + $0x1] sm:$0xff] %vm182_vm0, %v159_v9  ;;  %185 = vst.msk [vmem:[%s637_s24 + $0x19] sm:$0xff] %vm182_vm0, %v163_v8 }
  0xa6   : > { %197 = vst.msk [vmem:[%s637_s24 + $0x11] sm:$0x1] %vm196_vm1, %v159_v9  ;;  %198 = vst.msk [vmem:[%s637_s24 + $0x29] sm:$0x1] %vm196_vm1, %v163_v8 }
  0xa8   : > { %v165_v10 = vpop.permute.xlu1 %164  ;;  %v161_v11 = vpop.permute.xlu0 %160 }
  0xa9   : > { %184 = vst.msk [vmem:[%s637_s24 + $0x9] sm:$0xff] %vm182_vm0, %v161_v11  ;;  %186 = vst.msk [vmem:[%s637_s24 + $0x21] sm:$0xff] %vm182_vm0, %v165_v10 }
  0xaa   : > { %192 = vst.msk [vmem:[%s637_s24 - $0x7] sm:$0x80] %vm191_vm2, %v161_v11  ;;  %193 = vst.msk [vmem:[%s637_s24 + $0x11] sm:$0x80] %vm191_vm2, %v165_v10 }
  0xac   : > { %v169_v12 = vpop.permute.xlu1 %168  ;;  %v167_v13 = vpop.permute.xlu0 %166 }
  0xad   : > { %188 = vst.msk [vmem:[%s637_s24 + $0x39] sm:$0xff] %vm182_vm0, %v169_v12  ;;  %187 = vst.msk [vmem:[%s637_s24 + $0x31] sm:$0xff] %vm182_vm0, %v167_v13 }
  0xae   : > { %194 = vst.msk [vmem:[%s637_s24 + $0x29] sm:$0x80] %vm191_vm2, %v169_v12 }
  0xaf   : > { %199 = vst.msk [vmem:[%s637_s24 + $0x41] sm:$0x1] %vm196_vm1, %v167_v13 }
  0xb0   : > { %v173_v14 = vpop.permute.xlu1 %172  ;;  %v171_v15 = vpop.permute.xlu0 %170  ;;  %v202_v16 = vld [vmem:[%s637_s24 + $0x8] sm:$0xff]  ;;  %v203_v19 = vld [vmem:[%s637_s24 + $0x10] sm:$0x3]  ;;  %v205_v21 = vld [vmem:[%s637_s24 + $0x20] sm:$0xff] }
  0xb1   : > { %190 = vst.msk [vmem:[%s637_s24 + $0x51] sm:$0xff] %vm182_vm0, %v173_v14  ;;  %189 = vst.msk [vmem:[%s637_s24 + $0x49] sm:$0xff] %vm182_vm0, %v171_v15  ;;  %v201_v17 = vld [vmem:[%s637_s24] sm:$0xff]  ;;  %227 = vrot.lane.b32.xlu1 %v202_v16, %s524_s9 }
  0xb2   : > { %195 = vst.msk [vmem:[%s637_s24 + $0x41] sm:$0x80] %vm191_vm2, %v173_v14  ;;  %225 = vrot.lane.b32.xlu0 %v201_v17, %s524_s9  ;;  %v204_v18 = vld [vmem:[%s637_s24 + $0x18] sm:$0xff]  ;;  %v206_v20 = vld [vmem:[%s637_s24 + $0x28] sm:$0x3] }
  0xb3   : > { %200 = vst.msk [vmem:[%s637_s24 + $0x59] sm:$0x1] %vm196_vm1, %v171_v15 }
  0xb4   : > { %v208_v22 = vld [vmem:[%s637_s24 + $0x38] sm:$0xff] }
  0xb5   : > { %231 = vrot.lane.b32.xlu1 %v204_v18, %s524_s9  ;;  %v207_v23 = vld [vmem:[%s637_s24 + $0x30] sm:$0xff] }
  0xb6   : > { %229 = vrot.lane.b32.xlu0 %v203_v19, %s524_s9  ;;  %v209_v25 = vld [vmem:[%s637_s24 + $0x40] sm:$0x3] }
  0xb8   : > { %v211_v27 = vld [vmem:[%s637_s24 + $0x50] sm:$0xff] }
  0xb9   : > { %235 = vrot.lane.b32.xlu1 %v206_v20, %s524_s9  ;;  %v210_v24 = vld [vmem:[%s637_s24 + $0x48] sm:$0xff] }
  0xba   : > { %233 = vrot.lane.b32.xlu0 %v205_v21, %s524_s9  ;;  %v212_v26 = vld [vmem:[%s637_s24 + $0x58] sm:$0x3] }
  0xbd   : > { %239 = vrot.lane.b32.xlu1 %v208_v22, %s524_s9 }
  0xbe   : > { %237 = vrot.lane.b32.xlu0 %v207_v23, %s524_s9 }
  0xc1   : > { %243 = vrot.lane.b32.xlu1 %v210_v24, %s524_s9 }
  0xc2   : > { %241 = vrot.lane.b32.xlu0 %v209_v25, %s524_s9 }
  0xc5   : > { %247 = vrot.lane.b32.xlu1 %v212_v26, %s524_s9 }
  0xc6   : > { %245 = vrot.lane.b32.xlu0 %v211_v27, %s524_s9 }
  0xc9   : > { %277 = vrot.lane.b32.xlu1 %v202_v16, %s523_s20 }
  0xca   : > { %275 = vrot.lane.b32.xlu0 %v201_v17, %s523_s20 }
  0xcd   : > { %281 = vrot.lane.b32.xlu1 %v204_v18, %s523_s20 }
  0xce   : > { %279 = vrot.lane.b32.xlu0 %v203_v19, %s523_s20 }
  0xd1   : > { %285 = vrot.lane.b32.xlu1 %v206_v20, %s523_s20 }
  0xd2   : > { %283 = vrot.lane.b32.xlu0 %v205_v21, %s523_s20 }
  0xd5   : > { %289 = vrot.lane.b32.xlu1 %v208_v22, %s523_s20 }
  0xd6   : > { %287 = vrot.lane.b32.xlu0 %v207_v23, %s523_s20 }
  0xd9   : > { %293 = vrot.lane.b32.xlu1 %v210_v24, %s523_s20 }
  0xda   : > { %291 = vrot.lane.b32.xlu0 %v209_v25, %s523_s20 }
  0xdd   : > { %297 = vrot.lane.b32.xlu1 %v212_v26, %s523_s20 }
  0xde   : > { %295 = vrot.lane.b32.xlu0 %v211_v27, %s523_s20 }
 0x123   : > { %v228_v28 = vpop.permute.xlu1 %227 }
 0x124   : > { %v226_v29 = vpop.permute.xlu0 %225  ;;  %263 = vst.msk [vmem:[%s637_s24 + $0x8] sm:$0xff] %vm261_vm3, %v228_v28 }
 0x125   : > { %262 = vst.msk [vmem:[%s637_s24] sm:$0xff] %vm261_vm3, %v226_v29 }
 0x127   : > { %v232_v30 = vpop.permute.xlu1 %231 }
 0x128   : > { %v230_v31 = vpop.permute.xlu0 %229  ;;  %266 = vst.msk [vmem:[%s637_s24 + $0x18] sm:$0xff] %vm261_vm3, %v232_v30 }
 0x129   : > { %265 = vst.msk [vmem:[%s637_s24 + $0x10] sm:$0x3] %vm264_vm4, %v230_v31 }
 0x12b   : > { %v236_v32 = vpop.permute.xlu1 %235 }
 0x12c   : > { %v234_v33 = vpop.permute.xlu0 %233  ;;  %268 = vst.msk [vmem:[%s637_s24 + $0x28] sm:$0x3] %vm264_vm4, %v236_v32 }
 0x12d   : > { %267 = vst.msk [vmem:[%s637_s24 + $0x20] sm:$0xff] %vm261_vm3, %v234_v33 }
 0x12f   : > { %v240_v34 = vpop.permute.xlu1 %239 }
 0x130   : > { %v238_v35 = vpop.permute.xlu0 %237  ;;  %270 = vst.msk [vmem:[%s637_s24 + $0x38] sm:$0xff] %vm261_vm3, %v240_v34 }
 0x131   : > { %269 = vst.msk [vmem:[%s637_s24 + $0x30] sm:$0xff] %vm261_vm3, %v238_v35 }
 0x133   : > { %v244_v36 = vpop.permute.xlu1 %243 }
 0x134   : > { %v242_v37 = vpop.permute.xlu0 %241  ;;  %272 = vst.msk [vmem:[%s637_s24 + $0x48] sm:$0xff] %vm261_vm3, %v244_v36 }
 0x135   : > { %271 = vst.msk [vmem:[%s637_s24 + $0x40] sm:$0x3] %vm264_vm4, %v242_v37 }
 0x137   : > { %v248_v38 = vpop.permute.xlu1 %247 }
 0x138   : > { %v246_v39 = vpop.permute.xlu0 %245  ;;  %274 = vst.msk [vmem:[%s637_s24 + $0x58] sm:$0x3] %vm264_vm4, %v248_v38 }
 0x139   : > { %273 = vst.msk [vmem:[%s637_s24 + $0x50] sm:$0xff] %vm261_vm3, %v246_v39 }
 0x13b   : > { %v278_v40 = vpop.permute.xlu1 %277 }
 0x13c   : > { %v276_v41 = vpop.permute.xlu0 %275  ;;  %313 = vst.msk [vmem:[%s637_s24 + $0x8] sm:$0xff] %vm311_vm5, %v278_v40 }
 0x13d   : > { %312 = vst.msk [vmem:[%s637_s24] sm:$0xff] %vm311_vm5, %v276_v41 }
 0x13f   : > { %v282_v42 = vpop.permute.xlu1 %281 }
 0x140   : > { %v280_v43 = vpop.permute.xlu0 %279  ;;  %316 = vst.msk [vmem:[%s637_s24 + $0x18] sm:$0xff] %vm311_vm5, %v282_v42 }
 0x141   : > { %315 = vst.msk [vmem:[%s637_s24 + $0x10] sm:$0x3] %vm314_vm6, %v280_v43 }
 0x143   : > { %v286_v44 = vpop.permute.xlu1 %285 }
 0x144   : > { %v284_v45 = vpop.permute.xlu0 %283  ;;  %318 = vst.msk [vmem:[%s637_s24 + $0x28] sm:$0x3] %vm314_vm6, %v286_v44 }
 0x145   : > { %317 = vst.msk [vmem:[%s637_s24 + $0x20] sm:$0xff] %vm311_vm5, %v284_v45 }
 0x147   : > { %v290_v46 = vpop.permute.xlu1 %289 }
 0x148   : > { %v288_v47 = vpop.permute.xlu0 %287  ;;  %320 = vst.msk [vmem:[%s637_s24 + $0x38] sm:$0xff] %vm311_vm5, %v290_v46 }
 0x149   : > { %319 = vst.msk [vmem:[%s637_s24 + $0x30] sm:$0xff] %vm311_vm5, %v288_v47 }
 0x14b   : > { %v294_v48 = vpop.permute.xlu1 %293 }
 0x14c   : > { %v292_v49 = vpop.permute.xlu0 %291  ;;  %322 = vst.msk [vmem:[%s637_s24 + $0x48] sm:$0xff] %vm311_vm5, %v294_v48 }
 0x14d   : > { %321 = vst.msk [vmem:[%s637_s24 + $0x40] sm:$0x3] %vm314_vm6, %v292_v49 }
 0x14f   : > { %v298_v50 = vpop.permute.xlu1 %297 }
 0x150   : > { %v296_v51 = vpop.permute.xlu0 %295  ;;  %324 = vst.msk [vmem:[%s637_s24 + $0x58] sm:$0x3] %vm314_vm6, %v298_v50 }
 0x151   : > { %323 = vst.msk [vmem:[%s637_s24 + $0x50] sm:$0xff] %vm311_vm5, %v296_v51 }
 0x152 PF: > { %p11_p8 = scmp.ge.s32.totalorder %s555_s11, 4   ;;  %s761_s6 = smov %s510_s7 }
 0x153   : > { %s762_s7 = smov %s514_s8  ;;  %s763_s8 = smov %s565_s14 }
 0x154   : > { %s764_s9 = smov %s555_s11  ;;  %13 = sbr.rel (!%p11_p8) target bundleno = 3 (0x3), region = 64 }
 0x15b   :  { %349 = vsyncpa [#allocation3], 1 }
 0x15c   :  { %351 = vsyncpa [#allocation3 + $0x1], 1 }

</bundles_post_ra>
